<compile_context>
chip_gen: v7x
topology: tpu7x:2x2x1
jax: 0.10.0
libtpu: 0.0.40
codegen_flags: <defaults>
</compile_context>

<pallas_src>
import jax
import jax.numpy as jnp
from jax.experimental import pallas as pl
from jax.experimental.pallas import tpu as pltpu


def _shift_kernel(x_ref, shift_ref, o_ref):
    # x_ref: (r_blk, t_blk) tile, shift_ref: (r_blk, 1) column.
    # The lane broadcast of shift is a per-step splat; it is hidden under the
    # DMA in this mem-bound kernel (second-order even at small blocks).
    o_ref[...] = (x_ref[...] - shift_ref[...]).astype(o_ref.dtype)


def _round_up(a: int, b: int) -> int:
    return -(-a // b) * b


def shift_forward(
    x: jax.Array,
    shift: jax.Array,
    *,
    t_tile: int = 2048,
    vmem_block_budget_bytes: int = 2 << 20,  # ~2 MiB/block -> ~8-10 MiB live VMEM
    donate_x: bool = False,
) -> jax.Array:
    """x: (B, F, T), shift: (1, F, 1) -> (B, F, T) computing x - shift."""
    B, F, T = x.shape
    assert shift.shape == (1, F, 1), shift.shape
    # NOTE: the module keeps shift and x in the same dtype; if a caller mixes
    # dtypes (e.g. f32 shift with bf16 x) this down-casts shift before the
    # subtract rather than promoting x.
    shift = shift.astype(x.dtype)
    itemsize = jnp.dtype(x.dtype).itemsize
    pack = {1: 32, 2: 16, 4: 8}.get(itemsize, 8)  # sublane packing per dtype

    # ---- 2-D layout: dense rows, tiny per-row shift column ------------------
    R = B * F
    x2 = x.reshape(R, T)                                   # free (contiguous) view
    shift2 = jnp.broadcast_to(shift.reshape(1, F), (B, F)).reshape(R, 1)

    # ---- time tile -----------------------------------------------------------
    if T <= t_tile:
        t_blk = T                      # full extent along T: always legal
    else:
        assert t_tile % 128 == 0, "t_tile must be a multiple of 128 (lane width)"
        t_blk = t_tile                 # ragged last T block is masked by Pallas
    grid_t = pl.cdiv(T, t_blk)

    # ---- row tile from the VMEM budget (no divisibility requirement on R) ----
    bytes_per_row = t_blk * itemsize
    rows_from_budget = max(
        pack, (vmem_block_budget_bytes // max(bytes_per_row, 1)) // pack * pack
    )
    r_blk = min(rows_from_budget, R)   # == R (full extent) or a multiple of pack
    grid_r = pl.cdiv(R, r_blk)

    # ---- v7x megacore: never leave one TensorCore idle on a (1,1) grid -------
    if grid_r == 1 and grid_t == 1 and R > pack:
        r_blk = max(pack, _round_up(-(-R // 2), pack))     # multiple of pack, < R
        grid_r = pl.cdiv(R, r_blk)

    out2 = pl.pallas_call(
        _shift_kernel,
        out_shape=jax.ShapeDtypeStruct((R, T), x.dtype),
        grid_spec=pltpu.PrefetchScalarGridSpec(
            num_scalar_prefetch=0,
            grid=(grid_r, grid_t),
            in_specs=[
                pl.BlockSpec((r_blk, t_blk), lambda r, t: (r, t)),
                # shift column: constant along t, so it is not re-fetched per step.
                pl.BlockSpec((r_blk, 1), lambda r, t: (r, 0)),
            ],
            out_specs=pl.BlockSpec((r_blk, t_blk), lambda r, t: (r, t)),
        ),
        compiler_params=pltpu.CompilerParams(
            dimension_semantics=("parallel", "parallel"),
        ),
        input_output_aliases=({0: 0} if donate_x else {}),
    )(x2, shift2)

    return out2.reshape(B, F, T)


if __name__ == "__main__":
    key = jax.random.PRNGKey(0)
    kx1, ks, kx2, kx3, kx4 = jax.random.split(key, 5)

    # Case 1: small aligned shape (B=2, F=8, T=128); exercises the megacore
    # row-split path (grid becomes (2, 1)).
    B, F, T = 2, 8, 128
    x = jax.random.normal(kx1, (B, F, T), dtype=jnp.float32)
    # Module __init__ creates shift = zeros((1, F, 1)); use non-zero values so
    # the broadcasted subtraction is actually exercised.
    shift = jax.random.normal(ks, (1, F, 1), dtype=jnp.float32)
    out = jax.block_until_ready(shift_forward(x, shift))
    assert out.shape == x.shape and out.dtype == x.dtype
    assert jnp.allclose(out, x - shift, atol=1e-6), "mismatch (aligned path)"

    # Case 2: ragged last T block without any wrapper pad/slice
    # (T=300, t_tile=128 -> grid_t=3, masked tail).
    x2 = jax.random.normal(kx2, (B, F, 300), dtype=jnp.float32)
    out2 = jax.block_until_ready(shift_forward(x2, shift, t_tile=128))
    assert out2.shape == x2.shape and out2.dtype == x2.dtype
    assert jnp.allclose(out2, x2 - shift, atol=1e-6), "mismatch (ragged T path)"

    # Case 3: odd F and non-multiple-of-8 row count (R = 15) plus a tiny VMEM
    # budget forcing ragged row blocks as well (grid (2, 2), block (8, 128)).
    B3, F3, T3 = 3, 5, 200
    x3 = jax.random.normal(kx3, (B3, F3, T3), dtype=jnp.float32)
    shift3 = jax.random.normal(ks, (1, F3, 1), dtype=jnp.float32)
    out3 = jax.block_until_ready(
        shift_forward(x3, shift3, t_tile=128, vmem_block_budget_bytes=4096)
    )
    assert out3.shape == x3.shape and out3.dtype == x3.dtype
    assert jnp.allclose(out3, x3 - shift3, atol=1e-6), "mismatch (ragged R path)"

    # Case 4: short, non-128-multiple T (full-extent lane block, masked stores).
    x4 = jax.random.normal(kx4, (B, F, 64), dtype=jnp.float32)
    out4 = jax.block_until_ready(shift_forward(x4, shift))
    assert jnp.allclose(out4, x4 - shift, atol=1e-6), "mismatch (short T path)"

    print("KERNEL_OK")
</pallas_src>

<mosaic_0001>
module attributes {stable_mosaic.version = 11 : i64} {
  func.func @_shift_kernel(%arg0: i32, %arg1: i32, %arg2: memref<8x128xf32, #tpu.memory_space<vmem>>, %arg3: memref<8x1xf32, #tpu.memory_space<vmem>>, %arg4: memref<8x128xf32, #tpu.memory_space<vmem>>) attributes {dimension_semantics = [#tpu.dimension_semantics<parallel>, #tpu.dimension_semantics<parallel>], iteration_bounds = array<i64: 2, 1>, scalar_prefetch = 0 : i64, scratch_operands = 0 : i64, tpu.core_type = #tpu.core_type<tc>, window_params = [{transform_indices = @transform_0, window_bounds = array<i64: 8, 128>}, {transform_indices = @transform_1, window_bounds = array<i64: 8, 1>}, {transform_indices = @transform_2, window_bounds = array<i64: 8, 128>}]} {
    %c0 = arith.constant 0 : index
    %c0_0 = arith.constant 0 : index
    %0 = vector.load %arg2[%c0, %c0_0] : memref<8x128xf32, #tpu.memory_space<vmem>>, vector<8x128xf32>
    %c0_1 = arith.constant 0 : index
    %c0_2 = arith.constant 0 : index
    %1 = vector.load %arg3[%c0_1, %c0_2] : memref<8x1xf32, #tpu.memory_space<vmem>>, vector<8x1xf32>
    %2 = vector.broadcast %1 : vector<8x1xf32> to vector<8x128xf32>
    %3 = arith.subf %0, %2 : vector<8x128xf32>
    %c0_3 = arith.constant 0 : index
    %c0_4 = arith.constant 0 : index
    %4 = vector.load %arg4[%c0_3, %c0_4] : memref<8x128xf32, #tpu.memory_space<vmem>>, vector<8x128xf32>
    tpu.vector_store %arg4[%c0_3, %c0_4], %3 {strides = array<i32>} : memref<8x128xf32, #tpu.memory_space<vmem>>, vector<8x128xf32>,
    return
  }
  func.func @transform_0(%arg0: i32, %arg1: i32) -> (i32, i32) {
    %c0_i32 = arith.constant 0 : i32
    return %arg0, %arg1 : i32, i32
  }
  func.func @transform_1(%arg0: i32, %arg1: i32) -> (i32, i32) {
    %c0_i32 = arith.constant 0 : i32
    %c0_i32_0 = arith.constant 0 : i32
    return %arg0, %c0_i32 : i32, i32
  }
  func.func @transform_2(%arg0: i32, %arg1: i32) -> (i32, i32) {
    %c0_i32 = arith.constant 0 : i32
    return %arg0, %arg1 : i32, i32
  }
}

</mosaic_0001>

<bundles_post_ra>
// kernel: tpu_custom_call.1
= control target key start
LH: loop header
LB: loop body
LE: loop exit
PB: predicated region body
PF: predicated region fallthrough
CT: control target
= control target key end

     0   :  { %7 = vsyncpa [#allocation3], 0  ;;  %s569_s0 = inlined_call_operand.vmem [shape: f32[16,128], index: 0, kind: input, shape index: {}]   ;;  %s570_s1 = inlined_call_operand.vmem [shape: f32[16,1], index: 1, kind: input, shape index: {}]   ;;  %s571_s2 = inlined_call_operand.hbm [shape: f32[16,128], index: 2, kind: output, shape index: {}]  }
   0x1   :  { %9 = vsyncpa [#allocation3 + $0x1], 0  ;;  %s454_s9 = smov 0   ;;  %s456_s10 = smov 0  }
   0x2   :  { %s458_s11 = smov 0   ;;  %s460_s12 = smov 0  }
   0x3   :  { %s462_s13 = smov 0   ;;  %s464_s14 = smov 0  }
   0x4 LB: > { %s288_s15 = sadd.s32 4294967295, %s435_s14   ;;  %s289_s16 = sadd.s32 4294967294, %s435_s14   ;;  %s435_s14 = sphi %s464_s14, %s15_s14   ;;  %s431_s13 = sphi %s462_s13, %s578_s13   ;;  %s427_s12 = sphi %s460_s12, %s577_s12   ;;  %s423_s11 = sphi %s458_s11, %s576_s11   ;;  %s419_s10 = sphi %s456_s10, %s575_s10   ;;  %s415_s9 = sphi %s454_s9, %s574_s9  }
   0x5   : > { %s27_s17 = sadd.s32 1, %s431_s13  ;;  %s90_s18 = sadd.s32 1, %s423_s11 }
   0x6   : > { %p29_p0 = scmp.ge.s32.totalorder %s27_s17, 2  ;;  %p100_p1 = scmp.ne.s32.totalorder %s423_s11, %s419_s10 }
   0x7   : > { %p101_p2 = scmp.eq.s32.totalorder %s288_s15, 1  ;;  %p106_p3 = scmp.ne.s32.totalorder %s419_s10, %s415_s9 }
   0x8   : > { %s580_s17 = smov (%p29_p0, %s27_s17), 0  ;;  %p107_p5 = scmp.eq.s32.totalorder %s289_s16, 1 }
   0x9   : > { %p494_p4 = por %p101_p2, %p100_p1  ;;  %s85_s20 = ssub.s32 %s431_s13, %s580_s17 }
   0xa   : > { %p292_p6 = scmp.ge.s32.totalorder %s435_s14, 1  ;;  %p88_p7 = scmp.eq.s32.totalorder %s85_s20, 0 }
   0xb   : > { %p501_p8 = por %p107_p5, %p106_p3  ;;  %p142_p9 = scmp.lt.s32.totalorder %s435_s14, 3 }
   0xc   : > { %s507_s22 = scalar_select %p88_p7, %s423_s11, %s90_s18  }
   0xd   : > { %p143_p10 = pnand %p292_p6, %p142_p9 }
   0xe   : > { %p170_p11 = scmp.lt.s32.totalorder (!%p143_p10), %s427_s12, 1  ;;  %v437_v0 = vmov (!%p143_p10), 0   ;;  %s167_s28 = sand.u32 (!%p143_p10), 1, %s419_s10  }
   0xf   : > { %146 = sbr.rel (%p143_p10) target bundleno = 171 (0xab), region = 28  ;;  %356 = vset.pattern.permute.xlu0 (!%p143_p10), %v437_v0  ;;  %s293_s29 = sshll.u32 (!%p143_p10), %s167_s28, 3 }
  0x10   : > { %s297_s5 = sshll.u32 (!%p143_p10), %s427_s12, 7  ;;  %s169_s6 = scalar_lea.vmem (!%p143_p10), [#allocation2], %s293_s29 }
  0x11   : > { %s205_s7 = sshll.u32 (!%p143_p10), %s169_s6, 4  ;;  %s522_s16 = scalar_lea.hbm (!%p143_p10), %s571_s2, %s297_s5  ;;  %s524_s7 = int_to_ptr.vmem [resolvable:$true] %s205_s7 }
  0x12   : > { %s191_s18 = scalar_lea.sflag (!%p143_p10), [#allocation3], %s167_s28  ;;  %s357_s20 = scalar_lea.vmem (!%p143_p10), %s524_s7, 128 }
  0x13   : > { %p358_p12 = scmp.ne.s32.totalorder (!%p143_p10), %s524_s7, %s357_s20 }
  0x15   : > { %p359_p13 = pnand (!%p143_p10), %p358_p12, %p494_p4 }
  0x16   : > { %s171_s23 = scalar_select %p170_p11, %s427_s12, 1 }
  0x17   : > { %p360_p0 = pneg %p359_p13  ;;  %s438_s12 = smov [#allocation2]  }
  0x18   : > { %s294_s24 = sshll.u32 %s171_s23, 3  ;;  %s361_s23 = sshll.u32 %s438_s12, 4  ;;  %s362_s23 = int_to_ptr.vmem [resolvable:$false] %s361_s23 }
  0x19   : > { %s180_s27 = scalar_lea.vmem %s570_s1, %s294_s24  ;;  %s176_s4 = scalar_lea.vmem %s569_s0, %s294_s24 }
  0x1a   : > { %v182_v1 = vld [vmem:[%s180_s27] sm:$0xff]  ;;  %s363_s24 = scalar_lea.vmem %s362_s23, 256  ;;  %p364_p1 = scmp.lt.s32.totalorder %s524_s7, %s362_s23 }
  0x1b   : > { %185 = vperm.xlu0 %356, %v182_v1   ;;  %v181_v2 = vld [vmem:[%s176_s4] sm:$0xff]  ;;  %p365_p2 = scmp.lt.s32.totalorder %s363_s24, %s357_s20 }
  0x1d   : > { %p366_p3 = por %p365_p2, %p364_p1 }
  0x1f   : > { %p367_p5 = pnand %p366_p3, %p360_p0 }
  0x9a   : > { %v186_v3 = vpop.permute.xlu0 %185 }
  0x9b   : > { %v188_v4 = vsub.f32 %v181_v2, %v186_v3 }
  0x9d   : > { %189 = vst [vmem:[%s169_s6] sm:$0xff] %v188_v4 }
  0x9e   : > { %370 = shalt.err (!%p367_p5)
}
  0x9f   : > { %s371_s25 = scalar_lea.hbm %s522_s16, 128  ;;  %s375_s28 = scalar_lea.hbm %s571_s2, 256 }
  0xa0   : > { %p372_p6 = scmp.ne.s32.totalorder %s522_s16, %s371_s25  ;;  %p376_p10 = scmp.lt.u32.totalorder %s522_s16, %s571_s2 }
  0xa1   : > { %p377_p11 = scmp.lt.u32.totalorder %s375_s28, %s371_s25  ;;  %p379_p13 = scmp.lt.u32.totalorder %s371_s25, %s522_s16 }
  0xa2   : > { %p373_p7 = pnand %p372_p6, %p494_p4 }
  0xa3   : > { %p378_p12 = por %p377_p11, %p376_p10 }
  0xa4   : > { %p374_p9 = pneg %p373_p7 }
  0xa5   : > { %p380_p0 = por %p379_p13, %p378_p12 }
  0xa7   : > { %p381_p1 = pnand %p380_p0, %p374_p9 }
  0xa9   : > { %384 = shalt.err (!%p381_p1)
}
  0xaa   : > { %300 = dma.vmem_to_hbm [thread:$0]  (%p494_p4), %s524_s7, 128, %s522_s16, %s191_s18  }
  0xab PF: > { %p306_p2 = scmp.ge.s32.totalorder %s435_s14, 2  ;;  %s217_s3 = sand.u32 1, %s415_s9  }
  0xac   : > { %s218_s4 = scalar_lea.sflag [#allocation3], %s217_s3 }
  0xad   : > { %p303_p3 = pnand %p306_p2, %p501_p8 }
  0xaf   : > { %410 = dma.done.wait (!%p303_p3), %s218_s4, 128  }
  0xb0   : > { %412 = vsyncadd (!%p303_p3), %s218_s4, 4294967168  ;;  %s15_s14 = sadd.s32 1, %s435_s14   ;;  %s574_s9 = smov %s419_s10 }
  0xb1   : > { %p12_p5 = scmp.ge.s32.totalorder %s15_s14, 4   ;;  %s575_s10 = smov %s423_s11 }
  0xb2   : > { %s576_s11 = smov %s507_s22  ;;  %s577_s12 = smov %s431_s13 }
  0xb3   : > { %s578_s13 = smov %s580_s17  ;;  %14 = sbr.rel (!%p12_p5) target bundleno = 4 (0x4), region = 66 }
  0xba   :  { %223 = vsyncpa [#allocation3], 1 }
  0xbb   :  { %225 = vsyncpa [#allocation3 + $0x1], 1 }

</bundles_post_ra>
